<compile_context>
chip_gen: v7x
topology: tpu7x:2x2x1
jax: 0.10.0
libtpu: 0.0.40
codegen_flags: <defaults>
</compile_context>

<pallas_src>
import jax
import jax.numpy as jnp
from jax.experimental import pallas as pl
from jax.experimental.pallas import tpu as pltpu

_MIB = 1024 * 1024


def _cdiv(a, b):
    return (a + b - 1) // b


def _round_up(x, m):
    return ((x + m - 1) // m) * m


def _pick_ff_tile(requested, d_ff):
    """Largest multiple of 128 that divides d_ff and is <= requested (else d_ff)."""
    if d_ff <= requested or d_ff % 128 != 0:
        return d_ff
    t = (requested // 128) * 128
    while t >= 128:
        if d_ff % t == 0:
            return t
        t -= 128
    return d_ff


def _tpu_config():
    """Generation-aware (vmem_budget_bytes, default_tm, default_tf, split_rows)."""
    vmem_phys = None
    try:
        vmem_phys = int(getattr(pltpu.get_tpu_info(), "vmem_capacity_bytes"))
    except Exception:
        vmem_phys = None
    kind = ""
    try:
        kind = jax.devices()[0].device_kind.lower()
    except Exception:
        pass
    if vmem_phys is None:
        vmem_phys = 128 * _MIB if ("v5" in kind or "v6" in kind) else 64 * _MIB

    if vmem_phys >= 100 * _MIB:
        # v5e / v6e: 128 MiB physical VMEM, 1 TensorCore per chip.
        budget = 100 * _MIB
        if "v5" in kind:
            tm, tf = 384, 1024   # v5e roofline knee ~240 flops/byte
        else:
            tm, tf = 768, 1024   # v6e roofline knee ~700 flops/byte
        split_rows = False
    else:
        # v7x-like: 64 MiB physical VMEM, 2 TensorCores per chip.
        budget = max(32 * _MIB, min(56 * _MIB, vmem_phys - 8 * _MIB))
        tm, tf = 512, 512        # v7x roofline knee ~310 flops/byte
        split_rows = True
    return budget, tm, tf, split_rows


# ----------------------------- kernel bodies --------------------------------

def _ffn_resident_kernel(x_ref, w1_ref, b1_ref, w2_ref, b2_ref, o_ref):
    # Weights are full-size and resident in VMEM (constant index maps); 1-D grid.
    h = jnp.dot(x_ref[...].astype(w1_ref.dtype), w1_ref[...],
                preferred_element_type=jnp.float32)
    h = jnp.maximum(h + b1_ref[...], 0.0)
    # dropout == identity (eval mode).
    out = jnp.dot(h.astype(w2_ref.dtype), w2_ref[...],
                  preferred_element_type=jnp.float32)
    o_ref[...] = (out + b2_ref[...]).astype(o_ref.dtype)


def _ffn_blocked_f32out_kernel(x_ref, w1_ref, b1_ref, w2_ref, b2_ref, o_ref):
    # d_ff-blocked; partial products accumulate directly into the resident
    # (f32) output block -> no scratch accumulator needed.
    j = pl.program_id(1)
    h = jnp.dot(x_ref[...].astype(w1_ref.dtype), w1_ref[...],
                preferred_element_type=jnp.float32)
    h = jnp.maximum(h + b1_ref[...], 0.0)
    contrib = jnp.dot(h.astype(w2_ref.dtype), w2_ref[...],
                      preferred_element_type=jnp.float32)

    @pl.when(j == 0)
    def _init():
        o_ref[...] = contrib + b2_ref[...]

    @pl.when(j > 0)
    def _accum():
        o_ref[...] += contrib


def _ffn_blocked_acc_kernel(x_ref, w1_ref, b1_ref, w2_ref, b2_ref, o_ref, acc_ref):
    # d_ff-blocked with an f32 VMEM accumulator (non-f32 output dtypes).
    j = pl.program_id(1)

    @pl.when(j == 0)
    def _init():
        acc_ref[...] = jnp.zeros_like(acc_ref)

    h = jnp.dot(x_ref[...].astype(w1_ref.dtype), w1_ref[...],
                preferred_element_type=jnp.float32)
    h = jnp.maximum(h + b1_ref[...], 0.0)
    acc_ref[...] += jnp.dot(h.astype(w2_ref.dtype), w2_ref[...],
                            preferred_element_type=jnp.float32)

    @pl.when(j == pl.num_programs(1) - 1)
    def _finalize():
        o_ref[...] = (acc_ref[...] + b2_ref[...]).astype(o_ref.dtype)


# ------------------------------ host wrappers --------------------------------

def prepare_weights(w1, b1, w2, b2, compute_dtype=jnp.bfloat16):
    """One-time parameter prep (at load time, NOT per forward call):
    PyTorch Linear [out, in] -> [in, out] transpose AND cast to the MXU
    compute dtype (default bf16); biases kept as (1, N) f32 rows."""
    cdt = jnp.dtype(compute_dtype)
    w1c = jnp.asarray(w1).T.astype(cdt)
    w2c = jnp.asarray(w2).T.astype(cdt)
    b1r = jnp.asarray(b1).reshape(1, -1).astype(jnp.float32)
    b2r = jnp.asarray(b2).reshape(1, -1).astype(jnp.float32)
    return w1c, b1r, w2c, b2r


def position_wise_ffn(x, w1c, b1r, w2c, b2r, *, tm=None, tf=None, use_resident=None):
    """x: [B, S, d_model]; w1c: [d_model, d_ff], w2c: [d_ff, d_model] (already
    transposed + cast by prepare_weights); b1r/b2r: (1, d_ff)/(1, d_model) f32."""
    B, S, d_model = x.shape
    d_ff = w1c.shape[1]
    M = B * S

    out_dtype = x.dtype
    out_is_f32 = jnp.dtype(out_dtype) == jnp.float32
    x_item = jnp.dtype(x.dtype).itemsize
    w_item = jnp.dtype(w1c.dtype).itemsize
    out_item = jnp.dtype(out_dtype).itemsize

    budget, tm_def, tf_def, split_rows = _tpu_config()
    if tm is None:
        tm = tm_def
    if tf is None:
        tf = tf_def

    # Row tile: clamp to the row count, align to sublane packing of the
    # narrowest dtype touched (8 rows f32, 16 rows bf16, ...).
    row_align = max(8, 32 // min(x_item, w_item, out_item))
    tm = max(row_align, _round_up(min(tm, _round_up(M, row_align)), row_align))

    # v7x has 2 TensorCores: give the 'parallel' row axis >= 2 steps for
    # small-M (decode-like) shapes when possible.
    if split_rows and _cdiv(M, tm) < 2:
        tm_half = _round_up(_cdiv(M, 2), row_align)
        if tm_half < tm and _cdiv(M, tm_half) >= 2:
            tm = tm_half

    x2d = x.reshape(M, d_model)   # activation cast (if any) happens in-kernel

    def resident_need(tm_):
        return (2 * tm_ * d_model * x_item                 # x tiles
                + 2 * d_model * d_ff * w_item              # W1 (alloc headroom)
                + 2 * d_ff * d_model * w_item              # W2
                + 2 * (d_ff + d_model) * 4                 # biases
                + 2 * tm_ * d_model * out_item             # out tiles
                + tm_ * d_ff * 4                           # live h (f32)
                + tm_ * d_model * 4)                       # f32 out temp headroom

    resident_ok = resident_need(tm) <= int(0.9 * budget)
    if use_resident is None:
        use_resident = resident_ok
    elif use_resident and not resident_ok:
        use_resident = False

    n_row = _cdiv(M, tm)
    weight_bytes = (w1c.size + w2c.size) * w_item
    base_bytes = (x2d.size * x_item + (b1r.size + b2r.size) * 4
                  + M * d_model * out_item)

    if use_resident:
        # Weights resident in VMEM across all row tiles: HBM-read exactly once.
        grid = (n_row,)
        in_specs = [
            pl.BlockSpec((tm, d_model), lambda i: (i, 0)),
            pl.BlockSpec((d_model, d_ff), lambda i: (0, 0)),
            pl.BlockSpec((1, d_ff), lambda i: (0, 0)),
            pl.BlockSpec((d_ff, d_model), lambda i: (0, 0)),
            pl.BlockSpec((1, d_model), lambda i: (0, 0)),
        ]
        out_spec = pl.BlockSpec((tm, d_model), lambda i: (i, 0))
        scratch = []
        kernel = _ffn_resident_kernel
        dims = ("parallel",)
        need = resident_need(tm)
        bytes_accessed = base_bytes + weight_bytes          # weights read once
    else:
        tf = _pick_ff_tile(tf, d_ff)

        def blocked_need(tm_, tf_):
            return (2 * tm_ * d_model * x_item
                    + 2 * d_model * tf_ * w_item
                    + 2 * tf_ * d_model * w_item
                    + 2 * (tf_ + d_model) * 4
                    + 2 * tm_ * d_model * out_item
                    + (0 if out_is_f32 else tm_ * d_model * 4)   # acc scratch
                    + tm_ * tf_ * 4)                             # live h (f32)

        # Shrink tm (then tf) until the double-buffered working set fits.
        while blocked_need(tm, tf) > budget and tm > row_align:
            tm = max(row_align, _round_up(tm // 2, row_align))
        while blocked_need(tm, tf) > budget and tf > 128:
            new_tf = _pick_ff_tile(max(128, tf // 2), d_ff)
            if new_tf >= tf:
                break
            tf = new_tf

        n_row = _cdiv(M, tm)
        grid = (n_row, d_ff // tf)
        in_specs = [
            pl.BlockSpec((tm, d_model), lambda i, j: (i, 0)),
            pl.BlockSpec((d_model, tf), lambda i, j: (0, j)),
            pl.BlockSpec((1, tf), lambda i, j: (0, j)),
            pl.BlockSpec((tf, d_model), lambda i, j: (j, 0)),
            pl.BlockSpec((1, d_model), lambda i, j: (0, 0)),
        ]
        out_spec = pl.BlockSpec((tm, d_model), lambda i, j: (i, 0))
        if out_is_f32:
            scratch = []
            kernel = _ffn_blocked_f32out_kernel   # accumulate into resident o_ref
        else:
            scratch = [pltpu.VMEM((tm, d_model), jnp.float32)]
            kernel = _ffn_blocked_acc_kernel
        dims = ("parallel", "arbitrary")
        need = blocked_need(tm, tf)
        # Weights are re-streamed once per row tile in the blocked path.
        bytes_accessed = base_bytes + n_row * weight_bytes

    vmem_limit = int(min(budget, max(need * 5 // 4, 32 * _MIB)))

    cost = pl.CostEstimate(
        flops=4 * M * d_model * d_ff,            # two matmuls, 2*M*K*N each
        transcendentals=0,
        bytes_accessed=int(bytes_accessed),
    )

    out2d = pl.pallas_call(
        kernel,
        out_shape=jax.ShapeDtypeStruct((M, d_model), out_dtype),
        grid_spec=pltpu.PrefetchScalarGridSpec(
            num_scalar_prefetch=0,
            grid=grid,
            in_specs=in_specs,
            out_specs=out_spec,
            scratch_shapes=scratch,
        ),
        compiler_params=pltpu.CompilerParams(
            dimension_semantics=dims,
            vmem_limit_bytes=vmem_limit,
        ),
        cost_estimate=cost,
    )(x2d, w1c, b1r, w2c, b2r)
    return out2d.reshape(B, S, d_model)


def ffn_reference(x, w1, b1, w2, b2):
    """Pure-JAX f32 reference with PyTorch Linear layouts (weight [out, in])."""
    h = jnp.maximum(jnp.einsum("bsd,fd->bsf", x, w1) + b1, 0.0)
    return jnp.einsum("bsf,df->bsd", h, w2) + b2


if __name__ == "__main__":
    # Small shapes consistent with the module: batch=2, seq=8,
    # d_model=128, d_ff=256 (lane-aligned feature dims).
    B, S, d_model, d_ff = 2, 8, 128, 256

    key = jax.random.PRNGKey(0)
    kx, k1, k2, k3, k4 = jax.random.split(key, 5)

    x = jax.random.normal(kx, (B, S, d_model), dtype=jnp.float32)
    # PyTorch Linear parameter shapes: weight [out, in], bias [out].
    w1 = jax.random.normal(k1, (d_ff, d_model), dtype=jnp.float32) * 0.05
    b1 = jax.random.normal(k2, (d_ff,), dtype=jnp.float32) * 0.05
    w2 = jax.random.normal(k3, (d_model, d_ff), dtype=jnp.float32) * 0.05
    b2 = jax.random.normal(k4, (d_model,), dtype=jnp.float32) * 0.05

    # One-time transpose + bf16 cast at parameter-load time (not in hot path).
    params = prepare_weights(w1, b1, w2, b2)
    ref = ffn_reference(x, w1, b1, w2, b2)

    # Path 1: auto config (weight-resident 1-D-grid path for this small config).
    out = jax.block_until_ready(position_wise_ffn(x, *params))
    assert out.shape == (B, S, d_model)
    assert jnp.allclose(out, ref, atol=3e-2, rtol=3e-2), "resident path mismatch"

    # Path 2: force the d_ff-blocked variant (f32 out accumulates into o_ref).
    out_b = jax.block_until_ready(
        position_wise_ffn(x, *params, tf=128, use_resident=False))
    assert jnp.allclose(out_b, ref, atol=3e-2, rtol=3e-2), "blocked f32 path mismatch"

    # Path 3: blocked variant with bf16 activations (f32 scratch accumulator path).
    out_bf = jax.block_until_ready(
        position_wise_ffn(x.astype(jnp.bfloat16), *params, tf=128, use_resident=False))
    assert jnp.allclose(out_bf.astype(jnp.float32), ref, atol=6e-2, rtol=6e-2), \
        "blocked bf16 path mismatch"

    print("KERNEL_OK")
</pallas_src>

<mosaic_0001>
module attributes {stable_mosaic.version = 11 : i64} {
  func.func @_ffn_resident_kernel(%arg0: i32, %arg1: memref<16x128xf32, #tpu.memory_space<vmem>>, %arg2: memref<128x256xbf16, #tpu.memory_space<vmem>>, %arg3: memref<1x256xf32, #tpu.memory_space<vmem>>, %arg4: memref<256x128xbf16, #tpu.memory_space<vmem>>, %arg5: memref<1x128xf32, #tpu.memory_space<vmem>>, %arg6: memref<16x128xf32, #tpu.memory_space<vmem>>) attributes {dimension_semantics = [#tpu.dimension_semantics<parallel>], iteration_bounds = array<i64: 1>, scalar_prefetch = 0 : i64, scratch_operands = 0 : i64, tpu.core_type = #tpu.core_type<tc>, window_params = [{transform_indices = @transform_0, window_bounds = array<i64: 16, 128>}, {pipeline_mode = #tpu.pipeline_mode<synchronous>, transform_indices = @transform_1, window_bounds = array<i64: 128, 256>}, {pipeline_mode = #tpu.pipeline_mode<synchronous>, transform_indices = @transform_2, window_bounds = array<i64: 1, 256>}, {pipeline_mode = #tpu.pipeline_mode<synchronous>, transform_indices = @transform_3, window_bounds = array<i64: 256, 128>}, {pipeline_mode = #tpu.pipeline_mode<synchronous>, transform_indices = @transform_4, window_bounds = array<i64: 1, 128>}, {transform_indices = @transform_5, window_bounds = array<i64: 16, 128>}]} {
    %c0 = arith.constant 0 : index
    %c0_0 = arith.constant 0 : index
    %0 = vector.load %arg1[%c0, %c0_0] : memref<16x128xf32, #tpu.memory_space<vmem>>, vector<16x128xf32>
    %1 = arith.truncf %0 : vector<16x128xf32> to vector<16x128xbf16>
    %c0_1 = arith.constant 0 : index
    %c0_2 = arith.constant 0 : index
    %2 = vector.load %arg2[%c0_1, %c0_2] : memref<128x256xbf16, #tpu.memory_space<vmem>>, vector<128x256xbf16>
    %cst = arith.constant dense<0.000000e+00> : vector<16x256xf32>
    %3 = tpu.matmul %1, %2, %cst {dimension_numbers = #tpu.dot_dimension_numbers<[1], [0], [0], [1], [0, 0, 1, 1], [], []>} : vector<16x128xbf16>, vector<128x256xbf16>, vector<16x256xf32> -> vector<16x256xf32>
    %c0_3 = arith.constant 0 : index
    %c0_4 = arith.constant 0 : index
    %4 = vector.load %arg3[%c0_3, %c0_4] : memref<1x256xf32, #tpu.memory_space<vmem>>, vector<1x256xf32>
    %5 = vector.broadcast %4 : vector<1x256xf32> to vector<16x256xf32>
    %6 = arith.addf %3, %5 : vector<16x256xf32>
    %cst_5 = arith.constant 0.000000e+00 : f32
    %7 = vector.broadcast %cst_5 : f32 to vector<16x256xf32>
    %8 = arith.maximumf %6, %7 : vector<16x256xf32>
    %9 = arith.truncf %8 : vector<16x256xf32> to vector<16x256xbf16>
    %c0_6 = arith.constant 0 : index
    %c0_7 = arith.constant 0 : index
    %10 = vector.load %arg4[%c0_6, %c0_7] : memref<256x128xbf16, #tpu.memory_space<vmem>>, vector<256x128xbf16>
    %cst_8 = arith.constant dense<0.000000e+00> : vector<16x128xf32>
    %11 = tpu.matmul %9, %10, %cst_8 {dimension_numbers = #tpu.dot_dimension_numbers<[1], [0], [0], [1], [0, 0, 1, 1], [], []>} : vector<16x256xbf16>, vector<256x128xbf16>, vector<16x128xf32> -> vector<16x128xf32>
    %c0_9 = arith.constant 0 : index
    %c0_10 = arith.constant 0 : index
    %12 = vector.load %arg5[%c0_9, %c0_10] : memref<1x128xf32, #tpu.memory_space<vmem>>, vector<1x128xf32>
    %13 = vector.broadcast %12 : vector<1x128xf32> to vector<16x128xf32>
    %14 = arith.addf %11, %13 : vector<16x128xf32>
    %c0_11 = arith.constant 0 : index
    %c0_12 = arith.constant 0 : index
    %15 = vector.load %arg6[%c0_11, %c0_12] : memref<16x128xf32, #tpu.memory_space<vmem>>, vector<16x128xf32>
    tpu.vector_store %arg6[%c0_11, %c0_12], %14 {strides = array<i32>} : memref<16x128xf32, #tpu.memory_space<vmem>>, vector<16x128xf32>,
    return
  }
  func.func @transform_0(%arg0: i32) -> (i32, i32) {
    %c0_i32 = arith.constant 0 : i32
    %c0_i32_0 = arith.constant 0 : i32
    return %arg0, %c0_i32 : i32, i32
  }
  func.func @transform_1(%arg0: i32) -> (i32, i32) {
    %c0_i32 = arith.constant 0 : i32
    %c0_i32_0 = arith.constant 0 : i32
    %c0_i32_1 = arith.constant 0 : i32
    return %c0_i32, %c0_i32_0 : i32, i32
  }
  func.func @transform_2(%arg0: i32) -> (i32, i32) {
    %c0_i32 = arith.constant 0 : i32
    %c0_i32_0 = arith.constant 0 : i32
    %c0_i32_1 = arith.constant 0 : i32
    return %c0_i32, %c0_i32_0 : i32, i32
  }
  func.func @transform_3(%arg0: i32) -> (i32, i32) {
    %c0_i32 = arith.constant 0 : i32
    %c0_i32_0 = arith.constant 0 : i32
    %c0_i32_1 = arith.constant 0 : i32
    return %c0_i32, %c0_i32_0 : i32, i32
  }
  func.func @transform_4(%arg0: i32) -> (i32, i32) {
    %c0_i32 = arith.constant 0 : i32
    %c0_i32_0 = arith.constant 0 : i32
    %c0_i32_1 = arith.constant 0 : i32
    return %c0_i32, %c0_i32_0 : i32, i32
  }
  func.func @transform_5(%arg0: i32) -> (i32, i32) {
    %c0_i32 = arith.constant 0 : i32
    %c0_i32_0 = arith.constant 0 : i32
    return %arg0, %c0_i32 : i32, i32
  }
}

</mosaic_0001>

<bundles_post_ra>
// kernel: tpu_custom_call.1
= control target key start
LH: loop header
LB: loop body
LE: loop exit
PB: predicated region body
PF: predicated region fallthrough
CT: control target
= control target key end

     0   :  { %10 = vsyncpa [#allocation3], 0  ;;  %s726_s0 = inlined_call_operand.hbm [shape: f32[16,128], index: 0, kind: input, shape index: {}]   ;;  %s727_s1 = inlined_call_operand.hbm [shape: bf16[128,256], index: 1, kind: input, shape index: {}]   ;;  %s728_s2 = inlined_call_operand.vmem [shape: f32[1,256], index: 2, kind: input, shape index: {}]   ;;  %s729_s3 = inlined_call_operand.hbm [shape: bf16[256,128], index: 3, kind: input, shape index: {}]   ;;  %s730_s4 = inlined_call_operand.vmem [shape: f32[1,128], index: 4, kind: input, shape index: {}]   ;;  %s731_s5 = inlined_call_operand.hbm [shape: f32[16,128], index: 5, kind: output, shape index: {}]  }
   0x1   :  { %11 = vsyncpa [#allocation6], 0 }
   0x2   :  { %12 = vsyncpa [#allocation4], 0  ;;  %s617_s18 = smov [#allocation5]   ;;  %s618_s20 = smov [#allocation2]  }
   0x3   :  { %s30_s19 = sshll.u32 %s617_s18, 4  ;;  %s18_s21 = sshll.u32 %s618_s20, 4  ;;  %s31_s19 = int_to_ptr.vmem [resolvable:$true] %s30_s19  ;;  %s656_s21 = int_to_ptr.vmem [resolvable:$true] %s18_s21 }
   0x4   :  { %s523_s24 = scalar_lea.hbm %s727_s1, 2048 }
   0x5   :  { %p524_p0 = scmp.ne.s32.totalorder %s727_s1, %s523_s24  ;;  %p527_p1 = scmp.lt.u32.totalorder %s523_s24, %s727_s1 }
   0x7   :  { %p529_p2 = pnand %p527_p1, %p524_p0 }
   0x9   :  { %532 = shalt.err (!%p529_p2)
}
   0xa   :  { %s533_s29 = scalar_lea.vmem %s31_s19, 2048  ;;  %p538_p4 = scmp.lt.s32.totalorder %s31_s19, %s31_s19 }
   0xb   :  { %p534_p3 = scmp.ne.s32.totalorder %s31_s19, %s533_s29  ;;  %p539_p5 = scmp.lt.s32.totalorder %s533_s29, %s533_s29 }
   0xd   :  { %p540_p6 = por %p539_p5, %p538_p4 }
   0xf   :  { %p541_p7 = pnand %p540_p6, %p534_p3 }
  0x11   :  { %544 = shalt.err (!%p541_p7)
}
  0x12   :  { %s619_s30 = smov 128   ;;  %s620_s6 = smov 8  }
  0x13   :  { %36 = dma.hbm_to_vmem [thread:$0]  %s727_s1, 2048, %s31_s19, [#allocation6], %s619_s30, %s619_s30, %s620_s6  }
  0x14   :  { %s545_s11 = scalar_lea.hbm %s726_s0, 256 }
  0x15   :  { %p546_p8 = scmp.ne.s32.totalorder %s726_s0, %s545_s11  ;;  %p549_p9 = scmp.lt.u32.totalorder %s545_s11, %s726_s0 }
  0x17   :  { %p551_p10 = pnand %p549_p9, %p546_p8 }
  0x19   :  { %554 = shalt.err (!%p551_p10)
}
  0x1a   :  { %s555_s16 = scalar_lea.vmem %s656_s21, 256  ;;  %p560_p12 = scmp.lt.s32.totalorder %s656_s21, %s656_s21 }
  0x1b   :  { %p556_p11 = scmp.ne.s32.totalorder %s656_s21, %s555_s16  ;;  %p561_p13 = scmp.lt.s32.totalorder %s555_s16, %s555_s16 }
  0x1d   :  { %p562_p0 = por %p561_p13, %p560_p12 }
  0x1f   :  { %p563_p1 = pnand %p562_p0, %p556_p11 }
  0x21   :  { %566 = shalt.err (!%p563_p1)
}
  0x22   :  { %24 = dma.hbm_to_vmem [thread:$0]  %s726_s0, 256, %s656_s21, [#allocation3], %s619_s30, %s619_s30, %s620_s6  }
  0x23   :  { %s621_s18 = smov [#allocation7]   ;;  %s567_s23 = scalar_lea.hbm %s729_s3, 2048 }
  0x24   :  { %s44_s19 = sshll.u32 %s621_s18, 4  ;;  %p568_p2 = scmp.ne.s32.totalorder %s729_s3, %s567_s23  ;;  %s45_s19 = int_to_ptr.vmem [resolvable:$true] %s44_s19 }
  0x25   :  { %p571_p3 = scmp.lt.u32.totalorder %s567_s23, %s729_s3 }
  0x27   :  { %p573_p4 = pnand %p571_p3, %p568_p2 }
  0x29   :  { %576 = shalt.err (!%p573_p4)
}
  0x2a   :  { %s577_s28 = scalar_lea.vmem %s45_s19, 2048  ;;  %p582_p6 = scmp.lt.s32.totalorder %s45_s19, %s45_s19 }
  0x2b   :  { %p578_p5 = scmp.ne.s32.totalorder %s45_s19, %s577_s28  ;;  %p583_p7 = scmp.lt.s32.totalorder %s577_s28, %s577_s28 }
  0x2d   :  { %p584_p8 = por %p583_p7, %p582_p6 }
  0x2f   :  { %p585_p9 = pnand %p584_p8, %p578_p5 }
  0x31   :  { %588 = shalt.err (!%p585_p9)
}
  0x32   :  { %s622_s0 = smov 64   ;;  %s623_s21 = smov 4  }
  0x33   :  { %50 = dma.hbm_to_vmem [thread:$0]  %s729_s3, 2048, %s45_s19, [#allocation6], %s622_s0, %s622_s0, %s623_s21  }
  0x34   :  { %611 = dma.done.wait [#allocation3], 256  }
  0x35   :  { %612 = vsyncadd [#allocation3], 4294967040 }
  0x36   :  { %613 = dma.done.wait [#allocation6], 4096  }
  0x37   :  { %614 = vsyncadd [#allocation6], 4294963200  ;;  %v624_v0 = vmov 0   ;;  %v483_v1 = vld [vmem:[#allocation5 + $0x4] ss:$8 sps:$4 sm:$0xff]   ;;  %v511_v16 = vld [vmem:[#allocation7 + $0x50] sm:$0xff]   ;;  %v84_v36 = vlaneseq }
  0x38   :  { %206 = vmatprep.mubr.bf16.mxu0 %v624_v0  ;;  %v485_v2 = vld [vmem:[#allocation5] ss:$8 sps:$4 sm:$0xff]   ;;  %174 = vmatprep.subr.bf16.mxu0 %v483_v1  ;;  %v486_v3 = vld [vmem:[#allocation5 + $0x14] ss:$8 sps:$4 sm:$0xff]   ;;  %v488_v4 = vld [vmem:[#allocation5 + $0x10] ss:$8 sps:$4 sm:$0xff]  }
  0x39   :  { %175 = vmatpush1.bf16.msra.mxu0 %v485_v2  ;;  %v489_v5 = vld [vmem:[#allocation5 + $0x24] ss:$8 sps:$4 sm:$0xff]   ;;  %v491_v6 = vld [vmem:[#allocation5 + $0x20] ss:$8 sps:$4 sm:$0xff]   ;;  %v492_v7 = vld [vmem:[#allocation5 + $0x34] ss:$8 sps:$4 sm:$0xff]  }
  0x3a   :  { %176 = vmatprep.subr.bf16.mxu0 %v486_v3  ;;  %v494_v8 = vld [vmem:[#allocation5 + $0x30] ss:$8 sps:$4 sm:$0xff]   ;;  %v495_v9 = vld [vmem:[#allocation5 + $0x44] ss:$8 sps:$4 sm:$0xff]   ;;  %v497_v11 = vld [vmem:[#allocation5 + $0x40] ss:$8 sps:$4 sm:$0xff]  }
  0x3b   :  { %v507_v10 = vld [vmem:[#allocation7 + $0x40] sm:$0xff]   ;;  %v498_v13 = vld [vmem:[#allocation5 + $0x54] ss:$8 sps:$4 sm:$0xff]   ;;  %v509_v14 = vld [vmem:[#allocation7 + $0x48] sm:$0xff]   ;;  %v85_v37 = vshrl.u32 %v84_v36, 7  ;;  %s625_s10 = smov [#allocation8]  }
  0x3c   :  { %v508_v12 = vld [vmem:[#allocation7] sm:$0xff]   ;;  %452 = vmatprep.subr.bf16.mxu1 %v507_v10  ;;  %v510_v15 = vld [vmem:[#allocation7 + $0x8] sm:$0xff]   ;;  %v500_v17 = vld [vmem:[#allocation5 + $0x50] ss:$8 sps:$4 sm:$0xff]   ;;  %s406_s11 = sshll.u32 %s625_s10, 4  ;;  %s407_s11 = int_to_ptr.vmem [resolvable:$true] %s406_s11 }
  0x3d   :  { %177 = vmatpush1.bf16.msra.mxu0 %v488_v4  ;;  %453 = vmatpush3.bf16.msra.mxu1 %v508_v12  ;;  %v501_v18 = vld [vmem:[#allocation5 + $0x64] ss:$8 sps:$4 sm:$0xff]   ;;  %v512_v19 = vld [vmem:[#allocation7 + $0x10] sm:$0xff]   ;;  %v513_v20 = vld [vmem:[#allocation7 + $0x58] sm:$0xff]   ;;  %v86_v38 = vsub.s32 0, %v85_v37  ;;  %v90_v40 = vsub.s32 1, %v85_v37  ;;  %p594_p11 = scmp.lt.s32.totalorder %s407_s11, %s407_s11 }
  0x3e   :  { %178 = vmatprep.subr.bf16.mxu0 %v489_v5  ;;  %454 = vmatprep.subr.bf16.mxu1 %v509_v14  ;;  %v503_v21 = vld [vmem:[#allocation5 + $0x60] ss:$8 sps:$4 sm:$0xff]   ;;  %v504_v22 = vld [vmem:[#allocation5 + $0x74] ss:$8 sps:$4 sm:$0xff]   ;;  %v506_v25 = vld [vmem:[#allocation5 + $0x70] ss:$8 sps:$4 sm:$0xff]  }
  0x3f   :  { %v514_v23 = vld [vmem:[#allocation7 + $0x18] sm:$0xff]   ;;  %v515_v24 = vld [vmem:[#allocation7 + $0x60] sm:$0xff]   ;;  %v63_v26 = vld [vmem:[#allocation2] sm:$0xff]  ;;  %s589_s12 = scalar_lea.vmem %s407_s11, 256 }
  0x40   :  { %v64_v27 = vld [vmem:[#allocation2 + $0x8] sm:$0xff]  ;;  %v516_v28 = vld [vmem:[#allocation7 + $0x20] sm:$0xff]   ;;  %v517_v29 = vld [vmem:[#allocation7 + $0x68] sm:$0xff]   ;;  %p590_p10 = scmp.ne.s32.totalorder %s407_s11, %s589_s12  ;;  %p595_p12 = scmp.lt.s32.totalorder %s589_s12, %s589_s12 }
  0x41   :  { %179 = vmatpush1.bf16.msra.mxu0 %v491_v6  ;;  %455 = vmatpush3.bf16.msra.mxu1 %v510_v15  ;;  %v65_v30 = vpack.c.bf16 %v64_v27, %v63_v26  ;;  %v518_v31 = vld [vmem:[#allocation7 + $0x28] sm:$0xff]   ;;  %v519_v32 = vld [vmem:[#allocation7 + $0x70] sm:$0xff]   ;;  %v521_v34 = vld [vmem:[#allocation7 + $0x78] sm:$0xff]  }
  0x42   :  { %180 = vmatprep.subr.bf16.mxu0 %v492_v7  ;;  %456 = vmatprep.subr.bf16.mxu1 %v511_v16  ;;  %v520_v33 = vld [vmem:[#allocation7 + $0x30] sm:$0xff]   ;;  %v522_v35 = vld [vmem:[#allocation7 + $0x38] sm:$0xff]   ;;  %p596_p13 = por %p595_p12, %p594_p11 }
  0x43   :  { %v82_v39 = vld [vmem:[%s728_s2] sm:$0x3] }
  0x44   :  { %v87_v41 = vrot.slane %v82_v39, %v86_v38  ;;  %v91_v42 = vrot.slane %v82_v39, %v90_v40  ;;  %v435_v58 = vld [vmem:[%s730_s4] ss:$0 sm:$0xff]  ;;  %p597_p0 = pnand %p596_p13, %p590_p10 }
  0x45   :  { %181 = vmatpush1.bf16.msra.mxu0 %v494_v8  ;;  %457 = vmatpush3.bf16.msra.mxu1 %v512_v19 }
  0x46   :  { %182 = vmatprep.subr.bf16.mxu0 %v495_v9  ;;  %458 = vmatprep.subr.bf16.mxu1 %v513_v20 }
  0x49   :  { %183 = vmatpush1.bf16.msra.mxu0 %v497_v11  ;;  %459 = vmatpush3.bf16.msra.mxu1 %v514_v23 }
  0x4a   :  { %184 = vmatprep.subr.bf16.mxu0 %v498_v13  ;;  %460 = vmatprep.subr.bf16.mxu1 %v515_v24 }
  0x4d   :  { %185 = vmatpush1.bf16.msra.mxu0 %v500_v17  ;;  %461 = vmatpush3.bf16.msra.mxu1 %v516_v28 }
  0x4e   :  { %186 = vmatprep.subr.bf16.mxu0 %v501_v18  ;;  %462 = vmatprep.subr.bf16.mxu1 %v517_v29 }
  0x51   :  { %187 = vmatpush1.bf16.msra.mxu0 %v503_v21  ;;  %463 = vmatpush3.bf16.msra.mxu1 %v518_v31 }
  0x52   :  { %188 = vmatprep.subr.bf16.mxu0 %v504_v22  ;;  %464 = vmatprep.subr.bf16.mxu1 %v519_v32 }
  0x55   :  { %189 = vmatpush1.bf16.msra.mxu0 %v506_v25  ;;  %465 = vmatpush3.bf16.msra.mxu1 %v520_v33 }
  0x56   :  { %466 = vmatprep.subr.bf16.mxu1 %v521_v34 }
  0x58   :  { %207 = vmatmul.mubr.bf16.vlgmr.msra.gmra.mrb[0].mxu0 %v65_v30 }
  0x59   :  { %467 = vmatpush3.bf16.msra.mxu1 %v522_v35 }
 0x12b   :  { %v208_v43 = vpop.f32.mrb[0].mxu0 }
 0x12c   :  { %v209_v44 = vadd.f32 %v208_v43, %v87_v41  ;;  %v210_v45 = vpop.f32.mrb[1].mxu0 }
 0x12d   :  { %v211_v46 = vadd.f32 %v210_v45, %v91_v42  ;;  %v212_v47 = vpop.f32.mrb[2].mxu0 }
 0x12e   :  { %v213_v48 = vadd.f32 %v212_v47, %v87_v41  ;;  %v214_v49 = vpop.f32.mrb[3].mxu0  ;;  %v217_v51 = vmax.f32 %v209_v44, 0.0 }
 0x12f   :  { %v215_v50 = vadd.f32 %v214_v49, %v91_v42  ;;  %v218_v53 = vmax.f32 %v211_v46, 0.0 }
 0x130   :  { %v219_v52 = vmax.f32 %v213_v48, 0.0 }
 0x131   :  { %v220_v54 = vmax.f32 %v215_v50, 0.0 }
 0x132   :  { %v221_v55 = vpack.c.bf16 %v219_v52, %v217_v51 }
 0x133   :  { %v222_v56 = vpack.c.bf16 %v220_v54, %v218_v53 }
 0x135   :  { %390 = vmatprep.mubr.bf16.mxu1 %v222_v56 }
 0x136   :  { %391 = vmatmul.mubr.bf16.vlgmr.msra.gmra.mrb[0].mxu1 %v221_v55 }
 0x209   :  { %v468_v57 = vpop.f32.mrb[0].mxu1 }
 0x20a   :  { %v469_v59 = vpop.f32.mrb[1].mxu1 }
 0x20b   :  { %v470_v60 = vadd.f32 %v469_v59, %v468_v57  ;;  %v471_v61 = vpop.f32.mrb[2].mxu1 }
 0x20c   :  { %v472_v62 = vpop.f32.mrb[3].mxu1 }
 0x20d   :  { %v393_v63 = vadd.f32 %v470_v60, %v435_v58  ;;  %v473_v0 = vadd.f32 %v472_v62, %v471_v61 }
 0x20f   :  { %399 = vst [vmem:[#allocation8] sm:$0xff] %v393_v63  ;;  %v396_v1 = vadd.f32 %v473_v0, %v435_v58 }
 0x211   :  { %400 = vst [vmem:[#allocation8 + $0x8] sm:$0xff] %v396_v1 }
 0x212   :  { %600 = shalt.err (!%p597_p0)
}
 0x213   :  { %s601_s14 = scalar_lea.hbm %s731_s5, 256 }
 0x214   :  { %p602_p1 = scmp.ne.s32.totalorder %s731_s5, %s601_s14  ;;  %p605_p2 = scmp.lt.u32.totalorder %s601_s14, %s731_s5 }
 0x216   :  { %p607_p3 = pnand %p605_p2, %p602_p1 }
 0x218   :  { %610 = shalt.err (!%p607_p3)
}
 0x219   :  { %412 = dma.vmem_to_hbm [thread:$0]  %s407_s11, 256, %s731_s5, [#allocation4], %s619_s30, %s619_s30, %s620_s6  }
 0x21a   :  { %615 = dma.done.wait [#allocation4], 256  }
 0x21b   :  { %616 = vsyncadd [#allocation4], 4294967040 }
 0x21c   :  { %416 = vsyncpa [#allocation3], 1 }
 0x21d   :  { %417 = vsyncpa [#allocation6], 1 }
 0x21e   :  { %418 = vsyncpa [#allocation4], 1 }

</bundles_post_ra>
